<compile_context>
chip_gen: v7x
topology: tpu7x:2x2x1
jax: 0.10.0
libtpu: 0.0.40
codegen_flags: <defaults>
</compile_context>

<pallas_src>
import functools

import jax
import jax.numpy as jnp
from jax.experimental import pallas as pl
from jax.experimental.pallas import tpu as pltpu

_LANE = 128
_SUBLANE = 8
_ORDER = ("embed", "fc1", "fc2", "fc3", "head")


def _round_up(n, m):
    return ((n + m - 1) // m) * m


def _pad_to(a, shape):
    pads = tuple((0, t - s) for s, t in zip(a.shape, shape))
    if all(p == (0, 0) for p in pads):
        return a
    return jnp.pad(a, pads)


def pack_params(params, weight_dtype=jnp.bfloat16):
    """One-time packing of the MLP parameters for the kernel.

    Pads every feature dim EXCEPT the input dim to 128 lanes (input is
    streamed at its natural width), casts weights to the MXU dtype and biases
    to f32.  Call once; reuse the result for every forward call.
    Returns a flat tuple (w1, b1, ..., w5, b5).
    """
    ws, bs = zip(*(params[name] for name in _ORDER))
    dims = [ws[0].shape[0]] + [w.shape[1] for w in ws]          # feature chain
    pdims = [dims[0]] + [_round_up(d, _LANE) for d in dims[1:]]  # lane-padded
    packed = []
    for i, (w, b) in enumerate(zip(ws, bs)):
        packed.append(_pad_to(w, (pdims[i], pdims[i + 1])).astype(weight_dtype))
        packed.append(_pad_to(b.reshape(1, -1), (1, pdims[i + 1])).astype(jnp.float32))
    return tuple(packed)


def _mlp_kernel(x_ref, *refs):
    """Fused 5-layer MLP on one batch tile.  refs = (w1, b1, ..., w5, b5, o_ref)."""
    o_ref = refs[-1]
    wb = refs[:-1]
    n_layers = len(wb) // 2

    h = x_ref[...].astype(jnp.float32)            # f32 activations on the VPU
    for li in range(n_layers):
        w = wb[2 * li][...]                       # [K(_pad), N_pad], weight dtype
        b = wb[2 * li + 1][...]                   # [1,  N_pad], f32
        # Cast to the weight dtype only at the MXU input (no-op on the f32
        # path); always accumulate in f32; bias add + ReLU stay f32 on the VPU.
        z = jnp.dot(h.astype(w.dtype), w,
                    preferred_element_type=jnp.float32) + b
        h = jnp.maximum(z, 0.0) if li < n_layers - 1 else z
    o_ref[...] = h.astype(o_ref.dtype)            # lane-dense (128-wide) store


@functools.partial(jax.jit, static_argnames=("tile_b", "min_grid_steps"))
def past_feature_predictor(x, packed, *, tile_b=1024, min_grid_steps=1):
    """x: [B, in_dim] float32.  packed: result of pack_params().

    tile_b:         max batch-tile size (sweep 512-1024 on v5e/v6e; cap ~4096
                    on v7x's smaller VMEM if sweeping larger).
    min_grid_steps: set to 2 on v7x so the 'parallel' batch axis shards across
                    both TensorCores for mid-sized batches.
    """
    B, in_dim = x.shape
    assert packed[0].shape[0] == in_dim, "packed params do not match in_dim"
    out_pad = packed[-2].shape[1]                 # lane-padded output width

    # Balanced batch tiling: never pads more than (tile - 1) rows total and
    # keeps the requested minimum number of parallel grid steps.
    n_steps = max(int(min_grid_steps), pl.cdiv(B, tile_b))
    tile = _round_up(pl.cdiv(B, n_steps), _SUBLANE)
    b_padded = n_steps * tile

    x_p = _pad_to(x, (b_padded, in_dim))          # pad batch only; input stays narrow

    in_specs = [pl.BlockSpec((tile, in_dim), lambda i: (i, 0))]
    for arr in packed:                            # weights/biases: full-shape, resident
        in_specs.append(pl.BlockSpec(arr.shape, lambda i: (0, 0)))

    out = pl.pallas_call(
        _mlp_kernel,
        out_shape=jax.ShapeDtypeStruct((b_padded, out_pad), x.dtype),
        grid_spec=pl.GridSpec(
            grid=(n_steps,),
            in_specs=in_specs,
            out_specs=pl.BlockSpec((tile, out_pad), lambda i: (i, 0)),
        ),
        compiler_params=pltpu.CompilerParams(
            dimension_semantics=("parallel",)),
    )(x_p, *packed)

    return out[:B, :in_dim]


def init_params(key, in_dim, embed_dim):
    """Deterministic synthetic init (PyTorch-Linear-like uniform fan-in scale)."""
    dims = [
        ("embed", in_dim, embed_dim),
        ("fc1", embed_dim, 512),
        ("fc2", 512, embed_dim),
        ("fc3", embed_dim, 128),
        ("head", 128, in_dim),
    ]
    params = {}
    for name, fan_in, fan_out in dims:
        key, kw, kb = jax.random.split(key, 3)
        bound = 1.0 / jnp.sqrt(jnp.float32(fan_in))
        w = jax.random.uniform(kw, (fan_in, fan_out), jnp.float32, -bound, bound)
        b = jax.random.uniform(kb, (1, fan_out), jnp.float32, -bound, bound)
        params[name] = (w, b)
    return params


def reference_forward(x, params, weight_dtype=jnp.float32):
    """Pure-JAX reference matching the PyTorch forward (same cast discipline
    as the kernel: MXU inputs in weight_dtype, f32 accumulation/elementwise)."""
    h = x
    n = len(_ORDER)
    for i, name in enumerate(_ORDER):
        w, b = params[name]
        z = jnp.dot(h.astype(weight_dtype), w.astype(weight_dtype),
                    preferred_element_type=jnp.float32,
                    precision=jax.lax.Precision.HIGHEST) + b.astype(jnp.float32)
        h = jnp.maximum(z, 0.0) if i < n - 1 else z
    return h


if __name__ == "__main__":
    key = jax.random.PRNGKey(0)
    in_dim, embed_dim = 32, 64
    batch = 16

    key, kx = jax.random.split(key)
    x = jax.random.normal(kx, (batch, in_dim), jnp.float32)
    params = init_params(key, in_dim, embed_dim)

    # f32 weight path — checked against the HIGHEST-precision f32 reference.
    # (Tolerance allows for MXU multi-pass f32 vs XLA accumulation differences.)
    packed_f32 = pack_params(params, weight_dtype=jnp.float32)
    out_f32 = jax.block_until_ready(past_feature_predictor(x, packed_f32))
    ref_f32 = reference_forward(x, params, weight_dtype=jnp.float32)
    assert out_f32.shape == (batch, in_dim)
    assert jnp.allclose(out_f32, ref_f32, atol=1e-2, rtol=1e-2), "f32 mismatch"

    # bf16-weight perf path (v6e/v7x MXU config) — checked against a reference
    # performing the identical bf16 casts with f32 accumulation.
    packed_bf16 = pack_params(params, weight_dtype=jnp.bfloat16)
    out_bf16 = jax.block_until_ready(past_feature_predictor(x, packed_bf16))
    ref_bf16 = reference_forward(x, params, weight_dtype=jnp.bfloat16)
    assert out_bf16.shape == (batch, in_dim)
    assert jnp.allclose(out_bf16, ref_bf16, atol=2e-2, rtol=2e-2), "bf16 mismatch"

    # Multi-step grid path (what you would use on v7x: min_grid_steps=2 shards
    # the 'parallel' batch axis across both TensorCores).  Same math.
    out_2 = jax.block_until_ready(
        past_feature_predictor(x, packed_bf16, min_grid_steps=2))
    assert out_2.shape == (batch, in_dim)
    assert jnp.allclose(out_2, ref_bf16, atol=2e-2, rtol=2e-2), "multi-step mismatch"

    print("KERNEL_OK")
</pallas_src>

<mosaic_0001>
module attributes {stable_mosaic.version = 11 : i64} {
  func.func @_mlp_kernel(%arg0: i32, %arg1: memref<16x32xf32, #tpu.memory_space<vmem>>, %arg2: memref<32x128xf32, #tpu.memory_space<vmem>>, %arg3: memref<1x128xf32, #tpu.memory_space<vmem>>, %arg4: memref<128x512xf32, #tpu.memory_space<vmem>>, %arg5: memref<1x512xf32, #tpu.memory_space<vmem>>, %arg6: memref<512x128xf32, #tpu.memory_space<vmem>>, %arg7: memref<1x128xf32, #tpu.memory_space<vmem>>, %arg8: memref<128x128xf32, #tpu.memory_space<vmem>>, %arg9: memref<1x128xf32, #tpu.memory_space<vmem>>, %arg10: memref<128x128xf32, #tpu.memory_space<vmem>>, %arg11: memref<1x128xf32, #tpu.memory_space<vmem>>, %arg12: memref<16x128xf32, #tpu.memory_space<vmem>>) attributes {dimension_semantics = [#tpu.dimension_semantics<parallel>], iteration_bounds = array<i64: 1>, scalar_prefetch = 0 : i64, scratch_operands = 0 : i64, tpu.core_type = #tpu.core_type<tc>, window_params = [{transform_indices = @transform_0, window_bounds = array<i64: 16, 32>}, {pipeline_mode = #tpu.pipeline_mode<synchronous>, transform_indices = @transform_1, window_bounds = array<i64: 32, 128>}, {pipeline_mode = #tpu.pipeline_mode<synchronous>, transform_indices = @transform_2, window_bounds = array<i64: 1, 128>}, {pipeline_mode = #tpu.pipeline_mode<synchronous>, transform_indices = @transform_3, window_bounds = array<i64: 128, 512>}, {pipeline_mode = #tpu.pipeline_mode<synchronous>, transform_indices = @transform_4, window_bounds = array<i64: 1, 512>}, {pipeline_mode = #tpu.pipeline_mode<synchronous>, transform_indices = @transform_5, window_bounds = array<i64: 512, 128>}, {pipeline_mode = #tpu.pipeline_mode<synchronous>, transform_indices = @transform_6, window_bounds = array<i64: 1, 128>}, {pipeline_mode = #tpu.pipeline_mode<synchronous>, transform_indices = @transform_7, window_bounds = array<i64: 128, 128>}, {pipeline_mode = #tpu.pipeline_mode<synchronous>, transform_indices = @transform_8, window_bounds = array<i64: 1, 128>}, {pipeline_mode = #tpu.pipeline_mode<synchronous>, transform_indices = @transform_9, window_bounds = array<i64: 128, 128>}, {pipeline_mode = #tpu.pipeline_mode<synchronous>, transform_indices = @transform_10, window_bounds = array<i64: 1, 128>}, {transform_indices = @transform_11, window_bounds = array<i64: 16, 128>}]} {
    %c0 = arith.constant 0 : index
    %c0_0 = arith.constant 0 : index
    %0 = vector.load %arg1[%c0, %c0_0] : memref<16x32xf32, #tpu.memory_space<vmem>>, vector<16x32xf32>
    %c0_1 = arith.constant 0 : index
    %c0_2 = arith.constant 0 : index
    %1 = vector.load %arg2[%c0_1, %c0_2] : memref<32x128xf32, #tpu.memory_space<vmem>>, vector<32x128xf32>
    %c0_3 = arith.constant 0 : index
    %c0_4 = arith.constant 0 : index
    %2 = vector.load %arg3[%c0_3, %c0_4] : memref<1x128xf32, #tpu.memory_space<vmem>>, vector<1x128xf32>
    %cst = arith.constant dense<0.000000e+00> : vector<16x128xf32>
    %3 = tpu.matmul %0, %1, %cst {dimension_numbers = #tpu.dot_dimension_numbers<[1], [0], [0], [1], [0, 0, 1, 1], [], []>} : vector<16x32xf32>, vector<32x128xf32>, vector<16x128xf32> -> vector<16x128xf32>
    %4 = vector.broadcast %2 : vector<1x128xf32> to vector<16x128xf32>
    %5 = arith.addf %3, %4 : vector<16x128xf32>
    %cst_5 = arith.constant 0.000000e+00 : f32
    %6 = vector.broadcast %cst_5 : f32 to vector<16x128xf32>
    %7 = arith.maximumf %5, %6 : vector<16x128xf32>
    %c0_6 = arith.constant 0 : index
    %c0_7 = arith.constant 0 : index
    %8 = vector.load %arg4[%c0_6, %c0_7] : memref<128x512xf32, #tpu.memory_space<vmem>>, vector<128x512xf32>
    %c0_8 = arith.constant 0 : index
    %c0_9 = arith.constant 0 : index
    %9 = vector.load %arg5[%c0_8, %c0_9] : memref<1x512xf32, #tpu.memory_space<vmem>>, vector<1x512xf32>
    %cst_10 = arith.constant dense<0.000000e+00> : vector<16x512xf32>
    %10 = tpu.matmul %7, %8, %cst_10 {dimension_numbers = #tpu.dot_dimension_numbers<[1], [0], [0], [1], [0, 0, 1, 1], [], []>} : vector<16x128xf32>, vector<128x512xf32>, vector<16x512xf32> -> vector<16x512xf32>
    %11 = vector.broadcast %9 : vector<1x512xf32> to vector<16x512xf32>
    %12 = arith.addf %10, %11 : vector<16x512xf32>
    %cst_11 = arith.constant 0.000000e+00 : f32
    %13 = vector.broadcast %cst_11 : f32 to vector<16x512xf32>
    %14 = arith.maximumf %12, %13 : vector<16x512xf32>
    %c0_12 = arith.constant 0 : index
    %c0_13 = arith.constant 0 : index
    %15 = vector.load %arg6[%c0_12, %c0_13] : memref<512x128xf32, #tpu.memory_space<vmem>>, vector<512x128xf32>
    %c0_14 = arith.constant 0 : index
    %c0_15 = arith.constant 0 : index
    %16 = vector.load %arg7[%c0_14, %c0_15] : memref<1x128xf32, #tpu.memory_space<vmem>>, vector<1x128xf32>
    %cst_16 = arith.constant dense<0.000000e+00> : vector<16x128xf32>
    %17 = tpu.matmul %14, %15, %cst_16 {dimension_numbers = #tpu.dot_dimension_numbers<[1], [0], [0], [1], [0, 0, 1, 1], [], []>} : vector<16x512xf32>, vector<512x128xf32>, vector<16x128xf32> -> vector<16x128xf32>
    %18 = vector.broadcast %16 : vector<1x128xf32> to vector<16x128xf32>
    %19 = arith.addf %17, %18 : vector<16x128xf32>
    %cst_17 = arith.constant 0.000000e+00 : f32
    %20 = vector.broadcast %cst_17 : f32 to vector<16x128xf32>
    %21 = arith.maximumf %19, %20 : vector<16x128xf32>
    %c0_18 = arith.constant 0 : index
    %c0_19 = arith.constant 0 : index
    %22 = vector.load %arg8[%c0_18, %c0_19] : memref<128x128xf32, #tpu.memory_space<vmem>>, vector<128x128xf32>
    %c0_20 = arith.constant 0 : index
    %c0_21 = arith.constant 0 : index
    %23 = vector.load %arg9[%c0_20, %c0_21] : memref<1x128xf32, #tpu.memory_space<vmem>>, vector<1x128xf32>
    %cst_22 = arith.constant dense<0.000000e+00> : vector<16x128xf32>
    %24 = tpu.matmul %21, %22, %cst_22 {dimension_numbers = #tpu.dot_dimension_numbers<[1], [0], [0], [1], [0, 0, 1, 1], [], []>} : vector<16x128xf32>, vector<128x128xf32>, vector<16x128xf32> -> vector<16x128xf32>
    %25 = vector.broadcast %23 : vector<1x128xf32> to vector<16x128xf32>
    %26 = arith.addf %24, %25 : vector<16x128xf32>
    %cst_23 = arith.constant 0.000000e+00 : f32
    %27 = vector.broadcast %cst_23 : f32 to vector<16x128xf32>
    %28 = arith.maximumf %26, %27 : vector<16x128xf32>
    %c0_24 = arith.constant 0 : index
    %c0_25 = arith.constant 0 : index
    %29 = vector.load %arg10[%c0_24, %c0_25] : memref<128x128xf32, #tpu.memory_space<vmem>>, vector<128x128xf32>
    %c0_26 = arith.constant 0 : index
    %c0_27 = arith.constant 0 : index
    %30 = vector.load %arg11[%c0_26, %c0_27] : memref<1x128xf32, #tpu.memory_space<vmem>>, vector<1x128xf32>
    %cst_28 = arith.constant dense<0.000000e+00> : vector<16x128xf32>
    %31 = tpu.matmul %28, %29, %cst_28 {dimension_numbers = #tpu.dot_dimension_numbers<[1], [0], [0], [1], [0, 0, 1, 1], [], []>} : vector<16x128xf32>, vector<128x128xf32>, vector<16x128xf32> -> vector<16x128xf32>
    %32 = vector.broadcast %30 : vector<1x128xf32> to vector<16x128xf32>
    %33 = arith.addf %31, %32 : vector<16x128xf32>
    %c0_29 = arith.constant 0 : index
    %c0_30 = arith.constant 0 : index
    %34 = vector.load %arg12[%c0_29, %c0_30] : memref<16x128xf32, #tpu.memory_space<vmem>>, vector<16x128xf32>
    tpu.vector_store %arg12[%c0_29, %c0_30], %33 {strides = array<i32>} : memref<16x128xf32, #tpu.memory_space<vmem>>, vector<16x128xf32>,
    return
  }
  func.func @transform_0(%arg0: i32) -> (i32, i32) {
    %c0_i32 = arith.constant 0 : i32
    %c0_i32_0 = arith.constant 0 : i32
    return %arg0, %c0_i32 : i32, i32
  }
  func.func @transform_1(%arg0: i32) -> (i32, i32) {
    %c0_i32 = arith.constant 0 : i32
    %c0_i32_0 = arith.constant 0 : i32
    %c0_i32_1 = arith.constant 0 : i32
    return %c0_i32, %c0_i32_0 : i32, i32
  }
  func.func @transform_2(%arg0: i32) -> (i32, i32) {
    %c0_i32 = arith.constant 0 : i32
    %c0_i32_0 = arith.constant 0 : i32
    %c0_i32_1 = arith.constant 0 : i32
    return %c0_i32, %c0_i32_0 : i32, i32
  }
  func.func @transform_3(%arg0: i32) -> (i32, i32) {
    %c0_i32 = arith.constant 0 : i32
    %c0_i32_0 = arith.constant 0 : i32
    %c0_i32_1 = arith.constant 0 : i32
    return %c0_i32, %c0_i32_0 : i32, i32
  }
  func.func @transform_4(%arg0: i32) -> (i32, i32) {
    %c0_i32 = arith.constant 0 : i32
    %c0_i32_0 = arith.constant 0 : i32
    %c0_i32_1 = arith.constant 0 : i32
    return %c0_i32, %c0_i32_0 : i32, i32
  }
  func.func @transform_5(%arg0: i32) -> (i32, i32) {
    %c0_i32 = arith.constant 0 : i32
    %c0_i32_0 = arith.constant 0 : i32
    %c0_i32_1 = arith.constant 0 : i32
    return %c0_i32, %c0_i32_0 : i32, i32
  }
  func.func @transform_6(%arg0: i32) -> (i32, i32) {
    %c0_i32 = arith.constant 0 : i32
    %c0_i32_0 = arith.constant 0 : i32
    %c0_i32_1 = arith.constant 0 : i32
    return %c0_i32, %c0_i32_0 : i32, i32
  }
  func.func @transform_7(%arg0: i32) -> (i32, i32) {
    %c0_i32 = arith.constant 0 : i32
    %c0_i32_0 = arith.constant 0 : i32
    %c0_i32_1 = arith.constant 0 : i32
    return %c0_i32, %c0_i32_0 : i32, i32
  }
  func.func @transform_8(%arg0: i32) -> (i32, i32) {
    %c0_i32 = arith.constant 0 : i32
    %c0_i32_0 = arith.constant 0 : i32
    %c0_i32_1 = arith.constant 0 : i32
    return %c0_i32, %c0_i32_0 : i32, i32
  }
  func.func @transform_9(%arg0: i32) -> (i32, i32) {
    %c0_i32 = arith.constant 0 : i32
    %c0_i32_0 = arith.constant 0 : i32
    %c0_i32_1 = arith.constant 0 : i32
    return %c0_i32, %c0_i32_0 : i32, i32
  }
  func.func @transform_10(%arg0: i32) -> (i32, i32) {
    %c0_i32 = arith.constant 0 : i32
    %c0_i32_0 = arith.constant 0 : i32
    %c0_i32_1 = arith.constant 0 : i32
    return %c0_i32, %c0_i32_0 : i32, i32
  }
  func.func @transform_11(%arg0: i32) -> (i32, i32) {
    %c0_i32 = arith.constant 0 : i32
    %c0_i32_0 = arith.constant 0 : i32
    return %arg0, %c0_i32 : i32, i32
  }
}

</mosaic_0001>

<bundles_post_ra>
// kernel: past_feature_predictor.1
= control target key start
LH: loop header
LB: loop body
LE: loop exit
PB: predicated region body
PF: predicated region fallthrough
CT: control target
= control target key end

     0   :  { %16 = vsyncpa [#allocation3], 0  ;;  %s1702_s0 = inlined_call_operand.hbm [shape: f32[16,32], index: 0, kind: input, shape index: {}]   ;;  %s1703_s1 = inlined_call_operand.hbm [shape: f32[32,128], index: 1, kind: input, shape index: {}]   ;;  %s1704_s2 = inlined_call_operand.vmem [shape: f32[1,128], index: 2, kind: input, shape index: {}]   ;;  %s1705_s3 = inlined_call_operand.hbm [shape: f32[128,512], index: 3, kind: input, shape index: {}]   ;;  %s1706_s4 = inlined_call_operand.vmem [shape: f32[1,512], index: 4, kind: input, shape index: {}]   ;;  %s1707_s5 = inlined_call_operand.hbm [shape: f32[512,128], index: 5, kind: input, shape index: {}]   ;;  %s1708_s6 = inlined_call_operand.vmem [shape: f32[1,128], index: 6, kind: input, shape index: {}]   ;;  %s1709_s7 = inlined_call_operand.hbm [shape: f32[128,128], index: 7, kind: input, shape index: {}]   ;;  %s1710_s8 = inlined_call_operand.vmem [shape: f32[1,128], index: 8, kind: input, shape index: {}]   ;;  %s1711_s9 = inlined_call_operand.hbm [shape: f32[128,128], index: 9, kind: input, shape index: {}]   ;;  %s1712_s10 = inlined_call_operand.vmem [shape: f32[1,128], index: 10, kind: input, shape index: {}]   ;;  %s1713_s11 = inlined_call_operand.hbm [shape: f32[16,128], index: 11, kind: output, shape index: {}]  }
   0x1   :  { %17 = vsyncpa [#allocation6], 0 }
   0x2   :  { %18 = vsyncpa [#allocation9], 0 }
   0x3   :  { %19 = vsyncpa [#allocation12], 0 }
   0x4   :  { %20 = vsyncpa [#allocation4], 0  ;;  %s1490_s17 = smov [#allocation5]   ;;  %s1491_s19 = smov [#allocation8]  }
   0x5   :  { %s38_s18 = sshll.u32 %s1490_s17, 4  ;;  %s66_s20 = sshll.u32 %s1491_s19, 4  ;;  %s39_s18 = int_to_ptr.vmem [resolvable:$true] %s38_s18  ;;  %s1562_s20 = int_to_ptr.vmem [resolvable:$true] %s66_s20 }
   0x6   :  { %s1326_s23 = scalar_lea.hbm %s1703_s1, 512 }
   0x7   :  { %p1327_p0 = scmp.ne.s32.totalorder %s1703_s1, %s1326_s23  ;;  %p1330_p1 = scmp.lt.u32.totalorder %s1326_s23, %s1703_s1 }
   0x9   :  { %p1332_p2 = pnand %p1330_p1, %p1327_p0 }
   0xb   :  { %1335 = shalt.err (!%p1332_p2)
}
   0xc   :  { %s1336_s28 = scalar_lea.vmem %s39_s18, 512  ;;  %p1341_p4 = scmp.lt.s32.totalorder %s39_s18, %s39_s18 }
   0xd   :  { %p1337_p3 = scmp.ne.s32.totalorder %s39_s18, %s1336_s28  ;;  %p1342_p5 = scmp.lt.s32.totalorder %s1336_s28, %s1336_s28 }
   0xf   :  { %p1343_p6 = por %p1342_p5, %p1341_p4 }
  0x11   :  { %p1344_p7 = pnand %p1343_p6, %p1337_p3 }
  0x13   :  { %1347 = shalt.err (!%p1344_p7)
}
  0x14   :  { %s1492_s29 = smov 128   ;;  %s1493_s30 = smov 8  }
  0x15   :  { %44 = dma.hbm_to_vmem [thread:$0]  %s1703_s1, 512, %s39_s18, [#allocation6], %s1492_s29, %s1492_s29, %s1493_s30  }
  0x16   :  { %s1348_s16 = scalar_lea.hbm %s1707_s5, 8192 }
  0x17   :  { %p1349_p8 = scmp.ne.s32.totalorder %s1707_s5, %s1348_s16  ;;  %p1352_p9 = scmp.lt.u32.totalorder %s1348_s16, %s1707_s5 }
  0x19   :  { %p1354_p10 = pnand %p1352_p9, %p1349_p8 }
  0x1b   :  { %1357 = shalt.err (!%p1354_p10)
}
  0x1c   :  { %s1358_s23 = scalar_lea.vmem %s1562_s20, 8192  ;;  %p1363_p12 = scmp.lt.s32.totalorder %s1562_s20, %s1562_s20 }
  0x1d   :  { %p1359_p11 = scmp.ne.s32.totalorder %s1562_s20, %s1358_s23  ;;  %p1364_p13 = scmp.lt.s32.totalorder %s1358_s23, %s1358_s23 }
  0x1f   :  { %p1365_p0 = por %p1364_p13, %p1363_p12 }
  0x21   :  { %p1366_p1 = pnand %p1365_p0, %p1359_p11 }
  0x23   :  { %1369 = shalt.err (!%p1366_p1)
}
  0x24   :  { %72 = dma.hbm_to_vmem [thread:$0]  %s1707_s5, 8192, %s1562_s20, [#allocation9], %s1492_s29, %s1492_s29, %s1493_s30  }
  0x25   :  { %s1494_s24 = smov [#allocation2]   ;;  %s1495_s26 = smov [#allocation7]  }
  0x26   :  { %s26_s25 = sshll.u32 %s1494_s24, 4  ;;  %s52_s27 = sshll.u32 %s1495_s26, 4  ;;  %s27_s25 = int_to_ptr.vmem [resolvable:$true] %s26_s25  ;;  %s1599_s27 = int_to_ptr.vmem [resolvable:$true] %s52_s27 }
  0x27   :  { %s1370_s13 = scalar_lea.hbm %s1702_s0, 256 }
  0x28   :  { %p1371_p2 = scmp.ne.s32.totalorder %s1702_s0, %s1370_s13  ;;  %p1374_p3 = scmp.lt.u32.totalorder %s1370_s13, %s1702_s0 }
  0x2a   :  { %p1376_p4 = pnand %p1374_p3, %p1371_p2 }
  0x2c   :  { %1379 = shalt.err (!%p1376_p4)
}
  0x2d   :  { %s1380_s5 = scalar_lea.vmem %s27_s25, 256  ;;  %p1385_p6 = scmp.lt.s32.totalorder %s27_s25, %s27_s25 }
  0x2e   :  { %p1381_p5 = scmp.ne.s32.totalorder %s27_s25, %s1380_s5  ;;  %p1386_p7 = scmp.lt.s32.totalorder %s1380_s5, %s1380_s5 }
  0x30   :  { %p1387_p8 = por %p1386_p7, %p1385_p6 }
  0x32   :  { %p1388_p9 = pnand %p1387_p8, %p1381_p5 }
  0x34   :  { %1391 = shalt.err (!%p1388_p9)
}
  0x35   :  { %32 = dma.hbm_to_vmem [thread:$0]  %s1702_s0, 256, %s27_s25, [#allocation3], %s1492_s29, %s1492_s29, %s1493_s30  }
  0x36   :  { %s1392_s23 = scalar_lea.hbm %s1705_s3, 8192 }
  0x37   :  { %p1393_p10 = scmp.ne.s32.totalorder %s1705_s3, %s1392_s23  ;;  %p1396_p11 = scmp.lt.u32.totalorder %s1392_s23, %s1705_s3 }
  0x39   :  { %p1398_p12 = pnand %p1396_p11, %p1393_p10 }
  0x3b   :  { %1401 = shalt.err (!%p1398_p12)
}
  0x3c   :  { %s1402_s28 = scalar_lea.vmem %s1599_s27, 8192  ;;  %p1407_p0 = scmp.lt.s32.totalorder %s1599_s27, %s1599_s27 }
  0x3d   :  { %p1403_p13 = scmp.ne.s32.totalorder %s1599_s27, %s1402_s28  ;;  %p1408_p1 = scmp.lt.s32.totalorder %s1402_s28, %s1402_s28 }
  0x3f   :  { %p1409_p2 = por %p1408_p1, %p1407_p0 }
  0x41   :  { %p1410_p3 = pnand %p1409_p2, %p1403_p13 }
  0x43   :  { %1413 = shalt.err (!%p1410_p3)
}
  0x44   :  { %s1496_s0 = smov 512   ;;  %s1497_s25 = smov 32  }
  0x45   :  { %58 = dma.hbm_to_vmem [thread:$0]  %s1705_s3, 8192, %s1599_s27, [#allocation6], %s1496_s0, %s1496_s0, %s1497_s25  }
  0x46   :  { %s1498_s14 = smov [#allocation10]   ;;  %s1499_s16 = smov [#allocation11]  }
  0x47   :  { %s80_s15 = sshll.u32 %s1498_s14, 4  ;;  %s94_s17 = sshll.u32 %s1499_s16, 4  ;;  %s81_s15 = int_to_ptr.vmem [resolvable:$true] %s80_s15  ;;  %s1633_s17 = int_to_ptr.vmem [resolvable:$true] %s94_s17 }
  0x48   :  { %s1414_s19 = scalar_lea.hbm %s1709_s7, 2048 }
  0x49   :  { %p1415_p4 = scmp.ne.s32.totalorder %s1709_s7, %s1414_s19  ;;  %p1418_p5 = scmp.lt.u32.totalorder %s1414_s19, %s1709_s7 }
  0x4b   :  { %p1420_p6 = pnand %p1418_p5, %p1415_p4 }
  0x4d   :  { %1423 = shalt.err (!%p1420_p6)
}
  0x4e   :  { %s1424_s3 = scalar_lea.vmem %s81_s15, 2048  ;;  %p1429_p8 = scmp.lt.s32.totalorder %s81_s15, %s81_s15 }
  0x4f   :  { %p1425_p7 = scmp.ne.s32.totalorder %s81_s15, %s1424_s3  ;;  %p1430_p9 = scmp.lt.s32.totalorder %s1424_s3, %s1424_s3 }
  0x51   :  { %p1431_p10 = por %p1430_p9, %p1429_p8 }
  0x53   :  { %p1432_p11 = pnand %p1431_p10, %p1425_p7 }
  0x55   :  { %1435 = shalt.err (!%p1432_p11)
}
  0x56   :  { %86 = dma.hbm_to_vmem [thread:$0]  %s1709_s7, 2048, %s81_s15, [#allocation9], %s1492_s29, %s1492_s29, %s1493_s30  }
  0x57   :  { %s1436_s28 = scalar_lea.hbm %s1711_s9, 2048 }
  0x58   :  { %p1437_p12 = scmp.ne.s32.totalorder %s1711_s9, %s1436_s28  ;;  %p1440_p13 = scmp.lt.u32.totalorder %s1436_s28, %s1711_s9 }
  0x5a   :  { %p1442_p0 = pnand %p1440_p13, %p1437_p12 }
  0x5c   :  { %1445 = shalt.err (!%p1442_p0)
}
  0x5d   :  { %s1446_s14 = scalar_lea.vmem %s1633_s17, 2048  ;;  %p1451_p2 = scmp.lt.s32.totalorder %s1633_s17, %s1633_s17 }
  0x5e   :  { %p1447_p1 = scmp.ne.s32.totalorder %s1633_s17, %s1446_s14  ;;  %p1452_p3 = scmp.lt.s32.totalorder %s1446_s14, %s1446_s14 }
  0x60   :  { %p1453_p4 = por %p1452_p3, %p1451_p2 }
  0x62   :  { %p1454_p5 = pnand %p1453_p4, %p1447_p1 }
  0x64   :  { %1457 = shalt.err (!%p1454_p5)
}
  0x65   :  { %100 = dma.hbm_to_vmem [thread:$0]  %s1711_s9, 2048, %s1633_s17, [#allocation12], %s1492_s29, %s1492_s29, %s1493_s30  }
  0x66   :  { %1480 = dma.done.wait [#allocation3], 256  }
  0x67   :  { %1481 = vsyncadd [#allocation3], 4294967040 }
  0x68   :  { %1482 = dma.done.wait [#allocation6], 8704  }
  0x69   :  { %1483 = vsyncadd [#allocation6], 4294958592 }
  0x6a   :  { %1484 = dma.done.wait [#allocation9], 10240  }
  0x6b   :  { %1485 = vsyncadd [#allocation9], 4294957056 }
  0x6c   :  { %1486 = dma.done.wait [#allocation12], 2048  }
  0x6d   :  { %1487 = vsyncadd [#allocation12], 4294965248  ;;  %vm134_vm0 = vcmask 261120   ;;  %v123_v0 = vld [vmem:[#allocation5] sm:$0xff]  ;;  %v124_v1 = vld [vmem:[#allocation5 + $0x8] sm:$0xff]  ;;  %s1501_s22 = smov [#allocation13]  }
  0x6e   :  { %v125_v2 = vld [vmem:[#allocation5 + $0x10] sm:$0xff]  ;;  %v1114_v3 = vpack.c.bf16 %v124_v1, %v123_v0  ;;  %v126_v4 = vld [vmem:[#allocation5 + $0x18] sm:$0xff]  ;;  %v219_v7 = vld [vmem:[#allocation7 + $0x8] sm:$0xff]  ;;  %s894_s23 = sshll.u32 %s1501_s22, 4  ;;  %s895_s23 = int_to_ptr.vmem [resolvable:$true] %s894_s23 }
  0x6f   :  { %v121_v5 = vld [vmem:[#allocation2] sm:$0xff]  ;;  %v1118_v6 = vpack.c.bf16 %v126_v4, %v125_v2  ;;  %v223_v8 = vld [vmem:[#allocation7 + $0x28] sm:$0xff]  ;;  %v221_v9 = vld [vmem:[#allocation7 + $0x18] sm:$0xff]  ;;  %p1463_p7 = scmp.lt.s32.totalorder %s895_s23, %s895_s23 }
  0x70   :  { %1041 = vmatprep.mubr.msk.f32.mxu0 %vm134_vm0, %v121_v5  ;;  %1115 = vmatprep.subr.bf16.mxu0 %v1114_v3  ;;  %v1122_v10 = vpack.c.bf16 %v223_v8, %v219_v7  ;;  %v225_v11 = vld [vmem:[#allocation7 + $0x38] sm:$0xff]  ;;  %v218_v12 = vld [vmem:[#allocation7] sm:$0xff]  ;;  %v220_v15 = vld [vmem:[#allocation7 + $0x10] sm:$0xff] }
  0x71   :  { %v222_v13 = vld [vmem:[#allocation7 + $0x20] sm:$0xff]  ;;  %1117 = vmatpush3.bf16.msra.mxu0 %v1114_v3  ;;  %v227_v16 = vld [vmem:[#allocation7 + $0x48] sm:$0xff]  ;;  %v1154_v17 = vpack.c.bf16 %v225_v11, %v221_v9  ;;  %v224_v18 = vld [vmem:[#allocation7 + $0x30] sm:$0xff] }
  0x72   :  { %v1124_v14 = vpack.c.bf16 %v222_v13, %v218_v12  ;;  %1119 = vmatprep.subr.bf16.mxu0 %v1118_v6  ;;  %1123 = vmatprep.subr.bf16.mxu1 %v1122_v10  ;;  %v231_v19 = vld [vmem:[#allocation7 + $0x68] sm:$0xff]  ;;  %v229_v20 = vld [vmem:[#allocation7 + $0x58] sm:$0xff]  ;;  %v226_v23 = vld [vmem:[#allocation7 + $0x40] sm:$0xff]  ;;  %v1156_v29 = vpack.c.bf16 %v224_v18, %v220_v15 }
  0x73   :  { %v1126_v21 = vpack.c.bf16 %v231_v19, %v227_v16  ;;  %v233_v22 = vld [vmem:[#allocation7 + $0x78] sm:$0xff]  ;;  %v230_v24 = vld [vmem:[#allocation7 + $0x60] sm:$0xff]  ;;  %v235_v26 = vld [vmem:[#allocation7 + $0x88] sm:$0xff] }
  0x74   :  { %1125 = vmatpush1.bf16.msra.mxu1 %v1124_v14  ;;  %v1128_v25 = vpack.c.bf16 %v230_v24, %v226_v23  ;;  %v239_v27 = vld [vmem:[#allocation7 + $0xa8] sm:$0xff]  ;;  %v122_v28 = vld [vmem:[#allocation2 + $0x8] sm:$0xff]  ;;  %v228_v30 = vld [vmem:[#allocation7 + $0x50] sm:$0xff]  ;;  %v1158_v33 = vpack.c.bf16 %v233_v22, %v229_v20 }
  0x75   :  { %1121 = vmatpush3.bf16.msra.mxu0 %v1118_v6  ;;  %1127 = vmatprep.subr.bf16.mxu1 %v1126_v21  ;;  %v1130_v31 = vpack.c.bf16 %v239_v27, %v235_v26  ;;  %v234_v32 = vld [vmem:[#allocation7 + $0x80] sm:$0xff]  ;;  %v232_v34 = vld [vmem:[#allocation7 + $0x70] sm:$0xff]  ;;  %v237_v35 = vld [vmem:[#allocation7 + $0x98] sm:$0xff] }
  0x76   :  { %1155 = vmatprep.subr.bf16.mxu0 %v1154_v17  ;;  %v238_v36 = vld [vmem:[#allocation7 + $0xa0] sm:$0xff]  ;;  %v241_v37 = vld [vmem:[#allocation7 + $0xb8] sm:$0xff]  ;;  %v243_v39 = vld [vmem:[#allocation7 + $0xc8] sm:$0xff]  ;;  %v1160_v44 = vpack.c.bf16 %v232_v34, %v228_v30 }
  0x77   :  { %v1132_v38 = vpack.c.bf16 %v238_v36, %v234_v32  ;;  %v247_v40 = vld [vmem:[#allocation7 + $0xe8] sm:$0xff]  ;;  %v242_v42 = vld [vmem:[#allocation7 + $0xc0] sm:$0xff]  ;;  %v1162_v46 = vpack.c.bf16 %v241_v37, %v237_v35  ;;  %v236_v47 = vld [vmem:[#allocation7 + $0x90] sm:$0xff] }
  0x78   :  { %1129 = vmatpush1.bf16.msra.mxu1 %v1128_v25  ;;  %1042 = vmatmul.mubr.msk.f32.vlgmr.msra.gmra.mrb[0].mxu0 %vm134_vm0, %v122_v28  ;;  %v1134_v41 = vpack.c.bf16 %v247_v40, %v243_v39  ;;  %v246_v43 = vld [vmem:[#allocation7 + $0xe0] sm:$0xff]  ;;  %v251_v45 = vld [vmem:[#allocation7 + $0x108] sm:$0xff]  ;;  %v240_v48 = vld [vmem:[#allocation7 + $0xb0] sm:$0xff]  ;;  %v1500_v40 = vmov 0.0  }
  0x79   :  { %1131 = vmatprep.subr.bf16.mxu1 %v1130_v31  ;;  %1157 = vmatpush1.bf16.msra.mxu0 %v1156_v29  ;;  %v255_v49 = vld [vmem:[#allocation7 + $0x128] sm:$0xff]  ;;  %v245_v50 = vld [vmem:[#allocation7 + $0xd8] sm:$0xff]  ;;  %v1136_v52 = vpack.c.bf16 %v246_v43, %v242_v42  ;;  %v250_v54 = vld [vmem:[#allocation7 + $0x100] sm:$0xff]  ;;  %v1164_v56 = vpack.c.bf16 %v240_v48, %v236_v47 }
  0x7a   :  { %1159 = vmatprep.subr.bf16.mxu0 %v1158_v33  ;;  %v249_v51 = vld [vmem:[#allocation7 + $0xf8] sm:$0xff]  ;;  %v1138_v53 = vpack.c.bf16 %v255_v49, %v251_v45  ;;  %v254_v55 = vld [vmem:[#allocation7 + $0x120] sm:$0xff]  ;;  %v259_v57 = vld [vmem:[#allocation7 + $0x148] sm:$0xff]  ;;  %368 = vmatprep.mubr.f32.mxu1 %v1500_v40 }
  0x7b   :  { %v263_v58 = vld [vmem:[#allocation7 + $0x168] sm:$0xff]  ;;  %v1166_v59 = vpack.c.bf16 %v249_v51, %v245_v50  ;;  %v244_v60 = vld [vmem:[#allocation7 + $0xd0] sm:$0xff]  ;;  %v253_v62 = vld [vmem:[#allocation7 + $0x118] sm:$0xff]  ;;  %v1140_v0 = vpack.c.bf16 %v254_v55, %v250_v54  ;;  %445 = vmatprep.mubr.f32.mxu0 %v1500_v40 }
  0x7c   :  { %1133 = vmatpush1.bf16.msra.mxu1 %v1132_v38  ;;  %v248_v61 = vld [vmem:[#allocation7 + $0xf0] sm:$0xff]  ;;  %v257_v63 = vld [vmem:[#allocation7 + $0x138] sm:$0xff]  ;;  %v1142_v1 = vpack.c.bf16 %v263_v58, %v259_v57  ;;  %v258_v2 = vld [vmem:[#allocation7 + $0x140] sm:$0xff] }
  0x7d   :  { %1135 = vmatprep.subr.bf16.mxu1 %v1134_v41  ;;  %1161 = vmatpush1.bf16.msra.mxu0 %v1160_v44  ;;  %v262_v3 = vld [vmem:[#allocation7 + $0x160] sm:$0xff]  ;;  %v1168_v4 = vpack.c.bf16 %v248_v61, %v244_v60  ;;  %v267_v5 = vld [vmem:[#allocation7 + $0x188] sm:$0xff]  ;;  %v1170_v7 = vpack.c.bf16 %v257_v63, %v253_v62  ;;  %v252_v8 = vld [vmem:[#allocation7 + $0x110] sm:$0xff] }
  0x7e   :  { %1163 = vmatprep.subr.bf16.mxu0 %v1162_v46  ;;  %v271_v6 = vld [vmem:[#allocation7 + $0x1a8] sm:$0xff]  ;;  %v256_v9 = vld [vmem:[#allocation7 + $0x130] sm:$0xff]  ;;  %v261_v10 = vld [vmem:[#allocation7 + $0x158] sm:$0xff]  ;;  %v1144_v12 = vpack.c.bf16 %v262_v3, %v258_v2 }
  0x7f   :  { %v265_v11 = vld [vmem:[#allocation7 + $0x178] sm:$0xff]  ;;  %v1146_v13 = vpack.c.bf16 %v271_v6, %v267_v5  ;;  %v266_v14 = vld [vmem:[#allocation7 + $0x180] sm:$0xff]  ;;  %v1172_v16 = vpack.c.bf16 %v256_v9, %v252_v8  ;;  %v260_v18 = vld [vmem:[#allocation7 + $0x150] sm:$0xff] }
  0x80   :  { %1137 = vmatpush1.bf16.msra.mxu1 %v1136_v52  ;;  %v270_v15 = vld [vmem:[#allocation7 + $0x1a0] sm:$0xff]  ;;  %v1174_v17 = vpack.c.bf16 %v265_v11, %v261_v10  ;;  %v264_v19 = vld [vmem:[#allocation7 + $0x170] sm:$0xff]  ;;  %v269_v20 = vld [vmem:[#allocation7 + $0x198] sm:$0xff] }
  0x81   :  { %1139 = vmatprep.subr.bf16.mxu1 %v1138_v53  ;;  %1165 = vmatpush1.bf16.msra.mxu0 %v1164_v56  ;;  %v273_v21 = vld [vmem:[#allocation7 + $0x1b8] sm:$0xff]  ;;  %v1148_v22 = vpack.c.bf16 %v270_v15, %v266_v14  ;;  %v1176_v23 = vpack.c.bf16 %v264_v19, %v260_v18  ;;  %v268_v25 = vld [vmem:[#allocation7 + $0x190] sm:$0xff]  ;;  %v275_v28 = vld [vmem:[#allocation7 + $0x1c8] sm:$0xff] }
  0x82   :  { %1167 = vmatprep.subr.bf16.mxu0 %v1166_v59  ;;  %v1178_v24 = vpack.c.bf16 %v273_v21, %v269_v20  ;;  %v272_v26 = vld [vmem:[#allocation7 + $0x1b0] sm:$0xff]  ;;  %v279_v29 = vld [vmem:[#allocation7 + $0x1e8] sm:$0xff]  ;;  %v277_v30 = vld [vmem:[#allocation7 + $0x1d8] sm:$0xff] }
  0x83   :  { %v1180_v27 = vpack.c.bf16 %v272_v26, %v268_v25  ;;  %v1150_v31 = vpack.c.bf16 %v279_v29, %v275_v28  ;;  %v281_v32 = vld [vmem:[#allocation7 + $0x1f8] sm:$0xff]  ;;  %v274_v33 = vld [vmem:[#allocation7 + $0x1c0] sm:$0xff]  ;;  %v276_v36 = vld [vmem:[#allocation7 + $0x1d0] sm:$0xff] }
  0x84   :  { %1141 = vmatpush1.bf16.msra.mxu1 %v1140_v0  ;;  %v1182_v34 = vpack.c.bf16 %v281_v32, %v277_v30  ;;  %v278_v35 = vld [vmem:[#allocation7 + $0x1e0] sm:$0xff]  ;;  %v280_v37 = vld [vmem:[#allocation7 + $0x1f0] sm:$0xff]  ;;  %v483_v42 = vld [vmem:[#allocation8 + $0x88] sm:$0xff] }
  0x85   :  { %1143 = vmatprep.subr.bf16.mxu1 %v1142_v1  ;;  %1169 = vmatpush1.bf16.msra.mxu0 %v1168_v4  ;;  %v1152_v38 = vpack.c.bf16 %v278_v35, %v274_v33  ;;  %v1184_v39 = vpack.c.bf16 %v280_v37, %v276_v36  ;;  %v482_v41 = vld [vmem:[#allocation8 + $0x80] sm:$0xff]  ;;  %v515_v45 = vld [vmem:[#allocation8 + $0x188] sm:$0xff]  ;;  %v909_v47 = vld [vmem:[%s1704_s2] ss:$0 sm:$0xff] }
  0x86   :  { %1171 = vmatprep.subr.bf16.mxu0 %v1170_v7  ;;  %v514_v43 = vld [vmem:[#allocation8 + $0x180] sm:$0xff]  ;;  %v1186_v44 = vpack.c.bf16 %v483_v42, %v482_v41  ;;  %v467_v50 = vld [vmem:[#allocation8 + $0x8] sm:$0xff]  ;;  %v484_v54 = vld [vmem:[#allocation8 + $0x90] sm:$0xff] }
  0x87   :  { %v1218_v46 = vpack.c.bf16 %v515_v45, %v514_v43  ;;  %v466_v49 = vld [vmem:[#allocation8] sm:$0xff]  ;;  %v499_v53 = vld [vmem:[#allocation8 + $0x108] sm:$0xff]  ;;  %v485_v56 = vld [vmem:[#allocation8 + $0x98] sm:$0xff] }
  0x88   :  { %1145 = vmatpush1.bf16.msra.mxu1 %v1144_v12  ;;  %v498_v52 = vld [vmem:[#allocation8 + $0x100] sm:$0xff]  ;;  %v516_v57 = vld [vmem:[#allocation8 + $0x190] sm:$0xff]  ;;  %v517_v58 = vld [vmem:[#allocation8 + $0x198] sm:$0xff]  ;;  %v1188_v61 = vpack.c.bf16 %v467_v50, %v466_v49  ;;  %v1190_v1 = vpack.c.bf16 %v485_v56, %v484_v54 }
  0x89   :  { %1147 = vmatprep.subr.bf16.mxu1 %v1146_v13  ;;  %1173 = vmatpush1.bf16.msra.mxu0 %v1172_v16  ;;  %v1220_v62 = vpack.c.bf16 %v499_v53, %v498_v52  ;;  %v468_v63 = vld [vmem:[#allocation8 + $0x10] sm:$0xff]  ;;  %v469_v0 = vld [vmem:[#allocation8 + $0x18] sm:$0xff]  ;;  %v1222_v2 = vpack.c.bf16 %v517_v58, %v516_v57  ;;  %v486_v5 = vld [vmem:[#allocation8 + $0xa0] sm:$0xff] }
  0x8a   :  { %1175 = vmatprep.subr.bf16.mxu0 %v1174_v17  ;;  %v500_v3 = vld [vmem:[#allocation8 + $0x110] sm:$0xff]  ;;  %v501_v4 = vld [vmem:[#allocation8 + $0x118] sm:$0xff]  ;;  %v487_v6 = vld [vmem:[#allocation8 + $0xa8] sm:$0xff]  ;;  %v1192_v10 = vpack.c.bf16 %v469_v0, %v468_v63 }
  0x8b   :  { %v518_v7 = vld [vmem:[#allocation8 + $0x1a0] sm:$0xff]  ;;  %v519_v8 = vld [vmem:[#allocation8 + $0x1a8] sm:$0xff]  ;;  %v1224_v11 = vpack.c.bf16 %v501_v4, %v500_v3  ;;  %v1194_v14 = vpack.c.bf16 %v487_v6, %v486_v5  ;;  %v488_v18 = vld [vmem:[#allocation8 + $0xb0] sm:$0xff] }
  0x8c   :  { %1149 = vmatpush1.bf16.msra.mxu1 %v1148_v22  ;;  %v470_v12 = vld [vmem:[#allocation8 + $0x20] sm:$0xff]  ;;  %v471_v13 = vld [vmem:[#allocation8 + $0x28] sm:$0xff]  ;;  %v1226_v15 = vpack.c.bf16 %v519_v8, %v518_v7  ;;  %v489_v19 = vld [vmem:[#allocation8 + $0xb8] sm:$0xff] }
  0x8d   :  { %1177 = vmatpush1.bf16.msra.mxu0 %v1176_v23  ;;  %1151 = vmatprep.subr.bf16.mxu1 %v1150_v31  ;;  %v502_v16 = vld [vmem:[#allocation8 + $0x120] sm:$0xff]  ;;  %v503_v17 = vld [vmem:[#allocation8 + $0x128] sm:$0xff]  ;;  %v520_v20 = vld [vmem:[#allocation8 + $0x1b0] sm:$0xff]  ;;  %v1196_v22 = vpack.c.bf16 %v471_v13, %v470_v12  ;;  %v1198_v26 = vpack.c.bf16 %v489_v19, %v488_v18  ;;  %v284_v19 = vlaneseq }
  0x8e   :  { %1179 = vmatprep.subr.bf16.mxu0 %v1178_v24  ;;  %v521_v21 = vld [vmem:[#allocation8 + $0x1b8] sm:$0xff]  ;;  %v1228_v23 = vpack.c.bf16 %v503_v17, %v502_v16  ;;  %v472_v24 = vld [vmem:[#allocation8 + $0x30] sm:$0xff]  ;;  %v490_v30 = vld [vmem:[#allocation8 + $0xc0] sm:$0xff] }
  0x8f   :  { %v473_v25 = vld [vmem:[#allocation8 + $0x38] sm:$0xff]  ;;  %v504_v28 = vld [vmem:[#allocation8 + $0x130] sm:$0xff]  ;;  %v491_v31 = vld [vmem:[#allocation8 + $0xc8] sm:$0xff] }
  0x90   :  { %1153 = vmatpush1.bf16.msra.mxu1 %v1152_v38  ;;  %v505_v29 = vld [vmem:[#allocation8 + $0x138] sm:$0xff]  ;;  %v522_v32 = vld [vmem:[#allocation8 + $0x1c0] sm:$0xff]  ;;  %v523_v33 = vld [vmem:[#allocation8 + $0x1c8] sm:$0xff]  ;;  %v1202_v38 = vpack.c.bf16 %v491_v31, %v490_v30 }
  0x91   :  { %1181 = vmatpush1.bf16.msra.mxu0 %v1180_v27  ;;  %1187 = vmatprep.subr.bf16.mxu1 %v1186_v44  ;;  %v1230_v27 = vpack.c.bf16 %v521_v21, %v520_v20  ;;  %v1232_v35 = vpack.c.bf16 %v505_v29, %v504_v28  ;;  %v474_v36 = vld [vmem:[#allocation8 + $0x40] sm:$0xff]  ;;  %v475_v37 = vld [vmem:[#allocation8 + $0x48] sm:$0xff]  ;;  %v492_v42 = vld [vmem:[#allocation8 + $0xd0] sm:$0xff]  ;;  %v285_v20 = vshrl.u32 %v284_v19, 7 }
  0x92   :  { %1183 = vmatprep.subr.bf16.mxu0 %v1182_v34  ;;  %v1200_v34 = vpack.c.bf16 %v473_v25, %v472_v24  ;;  %v507_v41 = vld [vmem:[#allocation8 + $0x148] sm:$0xff]  ;;  %v493_v43 = vld [vmem:[#allocation8 + $0xd8] sm:$0xff]  ;;  %v524_v44 = vld [vmem:[#allocation8 + $0x1d0] sm:$0xff] }
  0x93   :  { %v525_v45 = vld [vmem:[#allocation8 + $0x1d8] sm:$0xff]  ;;  %v1206_v50 = vpack.c.bf16 %v493_v43, %v492_v42  ;;  %v508_v52 = vld [vmem:[#allocation8 + $0x150] sm:$0xff]  ;;  %v494_v54 = vld [vmem:[#allocation8 + $0xe0] sm:$0xff]  ;;  %v286_v21 = vsub.s32 0, %v285_v20  ;;  %v290_v24 = vsub.s32 1, %v285_v20  ;;  %v298_v25 = vsub.s32 3, %v285_v20 }
  0x94   :  { %v477_v49 = vld [vmem:[#allocation8 + $0x58] sm:$0xff]  ;;  %v526_v56 = vld [vmem:[#allocation8 + $0x1e0] sm:$0xff]  ;;  %v527_v57 = vld [vmem:[#allocation8 + $0x1e8] sm:$0xff] }
  0x95   :  { %1185 = vmatpush1.bf16.msra.mxu0 %v1184_v39  ;;  %v1234_v39 = vpack.c.bf16 %v523_v33, %v522_v32  ;;  %v509_v53 = vld [vmem:[#allocation8 + $0x158] sm:$0xff]  ;;  %v479_v63 = vld [vmem:[#allocation8 + $0x68] sm:$0xff]  ;;  %v510_v0 = vld [vmem:[#allocation8 + $0x160] sm:$0xff] }
  0x96   :  { %1219 = vmatprep.subr.bf16.mxu0 %v1218_v46  ;;  %v1204_v46 = vpack.c.bf16 %v475_v37, %v474_v36  ;;  %v496_v4 = vld [vmem:[#allocation8 + $0xf0] sm:$0xff]  ;;  %v497_v5 = vld [vmem:[#allocation8 + $0xf8] sm:$0xff]  ;;  %v689_v16 = vld [vmem:[#allocation10] sm:$0xff] }
  0x97   :  { %v528_v6 = vld [vmem:[#allocation8 + $0x1f0] sm:$0xff]  ;;  %v1214_v7 = vpack.c.bf16 %v497_v5, %v496_v4  ;;  %v529_v8 = vld [vmem:[#allocation8 + $0x1f8] sm:$0xff]  ;;  %v690_v17 = vld [vmem:[#allocation10 + $0x8] sm:$0xff] }
  0x98   :  { %v512_v13 = vld [vmem:[#allocation8 + $0x170] sm:$0xff]  ;;  %v1250_v18 = vpack.c.bf16 %v690_v17, %v689_v16  ;;  %v692_v37 = vld [vmem:[#allocation10 + $0x18] sm:$0xff]  ;;  %v701_v5 = vld [vmem:[#allocation10 + $0x60] sm:$0xff] }
  0x99   :  { %v691_v36 = vld [vmem:[#allocation10 + $0x10] sm:$0xff]  ;;  %v793_v17 = vld [vmem:[#allocation11 + $0x20] sm:$0xff] }
 0x14b   :  { %v1043_v48 = vpop.f32.mrb[0].mxu0 }
 0x14c   :  { %v207_v51 = vpop.f32.mrb[1].mxu0  ;;  %v213_v59 = vadd.f32 %v1043_v48, %v909_v47  ;;  %v476_v48 = vld [vmem:[#allocation8 + $0x50] sm:$0xff] }
 0x14d   :  { %v208_v55 = vadd.f32 %v909_v47, %v207_v51  ;;  %v1238_v51 = vpack.c.bf16 %v525_v45, %v524_v44  ;;  %v1208_v58 = vpack.c.bf16 %v477_v49, %v476_v48  ;;  %v1254_v44 = vpack.c.bf16 %v692_v37, %v691_v36 }
 0x14e   :  { %v217_v9 = vmax.f32 %v213_v59, 0.0  ;;  %v1240_v59 = vpack.c.bf16 %v509_v53, %v508_v52  ;;  %v693_v53 = vld [vmem:[#allocation10 + $0x20] sm:$0xff] }
 0x14f   :  { %v216_v60 = vmax.f32 %v208_v55, 0.0  ;;  %v495_v55 = vld [vmem:[#allocation8 + $0xe8] sm:$0xff] }
 0x151   :  { %369 = vmatmul.mubr.f32.vlgmr.msra.gmra.mrb[0].mxu1 %v216_v60  ;;  %446 = vmatmul.mubr.f32.vlgmr.msra.gmra.mrb[2].mxu0 %v216_v60  ;;  %v1210_v60 = vpack.c.bf16 %v495_v55, %v494_v54  ;;  %v694_v54 = vld [vmem:[#allocation10 + $0x28] sm:$0xff] }
 0x152   :  { %374 = vmatprep.mubr.f32.mxu1 %v1500_v40  ;;  %451 = vmatprep.mubr.f32.mxu0 %v1500_v40  ;;  %v506_v40 = vld [vmem:[#allocation8 + $0x140] sm:$0xff] }
 0x153   :  { %1189 = vmatpush3.bf16.msra.mxu1 %v1188_v61  ;;  %1221 = vmatpush3.bf16.msra.mxu0 %v1220_v62  ;;  %v1236_v47 = vpack.c.bf16 %v507_v41, %v506_v40  ;;  %v1242_v61 = vpack.c.bf16 %v527_v57, %v526_v56  ;;  %v478_v62 = vld [vmem:[#allocation8 + $0x60] sm:$0xff] }
 0x154   :  { %1191 = vmatprep.subr.bf16.mxu1 %v1190_v1  ;;  %1223 = vmatprep.subr.bf16.mxu0 %v1222_v2  ;;  %v1212_v1 = vpack.c.bf16 %v479_v63, %v478_v62  ;;  %v511_v2 = vld [vmem:[#allocation8 + $0x168] sm:$0xff]  ;;  %v697_v63 = vld [vmem:[#allocation10 + $0x40] sm:$0xff] }
 0x155   :  { %375 = vmatmul.mubr.f32.gmra.mrb[2].mxu1 %v217_v9  ;;  %452 = vmatmul.mubr.f32.gmra.mrb[4].mxu0 %v217_v9  ;;  %v1244_v3 = vpack.c.bf16 %v511_v2, %v510_v0  ;;  %v480_v9 = vld [vmem:[#allocation8 + $0x70] sm:$0xff]  ;;  %v698_v0 = vld [vmem:[#allocation10 + $0x48] sm:$0xff] }
 0x156   :  { %v699_v2 = vld [vmem:[#allocation10 + $0x50] sm:$0xff] }
 0x157   :  { %1193 = vmatpush3.bf16.msra.mxu1 %v1192_v10  ;;  %1225 = vmatpush3.bf16.msra.mxu0 %v1224_v11  ;;  %v481_v10 = vld [vmem:[#allocation8 + $0x78] sm:$0xff]  ;;  %v1246_v11 = vpack.c.bf16 %v529_v8, %v528_v6  ;;  %v702_v6 = vld [vmem:[#allocation10 + $0x68] sm:$0xff]  ;;  %v703_v8 = vld [vmem:[#allocation10 + $0x70] sm:$0xff] }
 0x158   :  { %1195 = vmatprep.subr.bf16.mxu1 %v1194_v14  ;;  %1227 = vmatprep.subr.bf16.mxu0 %v1226_v15  ;;  %v1216_v12 = vpack.c.bf16 %v481_v10, %v480_v9  ;;  %v513_v14 = vld [vmem:[#allocation8 + $0x178] sm:$0xff] }
 0x159   :  { %v1248_v15 = vpack.c.bf16 %v513_v14, %v512_v13  ;;  %v704_v9 = vld [vmem:[#allocation10 + $0x78] sm:$0xff]  ;;  %v791_v13 = vld [vmem:[#allocation11 + $0x10] sm:$0xff] }
 0x15a   :  { %v1278_v10 = vpack.c.bf16 %v704_v9, %v703_v8 }
 0x15b   :  { %1197 = vmatpush3.bf16.msra.mxu1 %v1196_v22  ;;  %1229 = vmatpush3.bf16.msra.mxu0 %v1228_v23  ;;  %v294_v22 = vsub.s32 2, %v285_v20  ;;  %v282_v23 = vld [vmem:[%s1706_s4] sm:$0xf] }
 0x15c   :  { %1199 = vmatprep.subr.bf16.mxu1 %v1198_v26  ;;  %1231 = vmatprep.subr.bf16.mxu0 %v1230_v27  ;;  %v287_v26 = vrot.slane %v282_v23, %v286_v21  ;;  %v291_v28 = vrot.slane %v282_v23, %v290_v24  ;;  %v299_v29 = vrot.slane %v282_v23, %v298_v25  ;;  %v795_v20 = vld [vmem:[#allocation11 + $0x30] sm:$0xff]  ;;  %v796_v21 = vld [vmem:[#allocation11 + $0x38] sm:$0xff]  ;;  %v798_v24 = vld [vmem:[#allocation11 + $0x48] sm:$0xff] }
 0x15d   :  { %v295_v27 = vrot.slane %v282_v23, %v294_v22  ;;  %v1294_v22 = vpack.c.bf16 %v796_v21, %v795_v20  ;;  %v797_v23 = vld [vmem:[#allocation11 + $0x40] sm:$0xff] }
 0x15e   :  { %v1298_v25 = vpack.c.bf16 %v798_v24, %v797_v23 }
 0x15f   :  { %1201 = vmatpush3.bf16.msra.mxu1 %v1200_v34  ;;  %1233 = vmatpush3.bf16.msra.mxu0 %v1232_v35 }
 0x160   :  { %1203 = vmatprep.subr.bf16.mxu1 %v1202_v38  ;;  %1235 = vmatprep.subr.bf16.mxu0 %v1234_v39 }
 0x163   :  { %1205 = vmatpush3.bf16.msra.mxu1 %v1204_v46  ;;  %1237 = vmatpush3.bf16.msra.mxu0 %v1236_v47 }
 0x164   :  { %1207 = vmatprep.subr.bf16.mxu1 %v1206_v50  ;;  %1239 = vmatprep.subr.bf16.mxu0 %v1238_v51 }
 0x167   :  { %1209 = vmatpush3.bf16.msra.mxu1 %v1208_v58  ;;  %1241 = vmatpush3.bf16.msra.mxu0 %v1240_v59  ;;  %v1258_v59 = vpack.c.bf16 %v694_v54, %v693_v53  ;;  %v913_v54 = vld [vmem:[%s1710_s8] ss:$0 sm:$0xff]  ;;  %s1458_s8 = scalar_lea.vmem %s895_s23, 256 }
 0x168   :  { %1211 = vmatprep.subr.bf16.mxu1 %v1210_v60  ;;  %1243 = vmatprep.subr.bf16.mxu0 %v1242_v61  ;;  %v695_v60 = vld [vmem:[#allocation10 + $0x30] sm:$0xff]  ;;  %v696_v61 = vld [vmem:[#allocation10 + $0x38] sm:$0xff]  ;;  %p1459_p6 = scmp.ne.s32.totalorder %s895_s23, %s1458_s8  ;;  %p1464_p8 = scmp.lt.s32.totalorder %s1458_s8, %s1458_s8 }
 0x169   :  { %v1262_v62 = vpack.c.bf16 %v696_v61, %v695_v60  ;;  %v914_v61 = vld [vmem:[%s1712_s10] ss:$0 sm:$0xff] }
 0x16a   :  { %p1465_p9 = por %p1464_p8, %p1463_p7 }
 0x16b   :  { %1213 = vmatpush3.bf16.msra.mxu1 %v1212_v1  ;;  %1245 = vmatpush3.bf16.msra.mxu0 %v1244_v3  ;;  %v1266_v1 = vpack.c.bf16 %v698_v0, %v697_v63  ;;  %v700_v3 = vld [vmem:[#allocation10 + $0x58] sm:$0xff] }
 0x16c   :  { %1215 = vmatprep.subr.bf16.mxu1 %v1214_v7  ;;  %1247 = vmatprep.subr.bf16.mxu0 %v1246_v11  ;;  %v1270_v4 = vpack.c.bf16 %v700_v3, %v699_v2  ;;  %v1274_v7 = vpack.c.bf16 %v702_v6, %v701_v5  ;;  %v789_v11 = vld [vmem:[#allocation11] sm:$0xff]  ;;  %p1466_p10 = pnand %p1465_p9, %p1459_p6 }
 0x16f   :  { %1217 = vmatpush3.bf16.msra.mxu1 %v1216_v12  ;;  %1249 = vmatpush3.bf16.msra.mxu0 %v1248_v15  ;;  %v790_v12 = vld [vmem:[#allocation11 + $0x8] sm:$0xff]  ;;  %v792_v15 = vld [vmem:[#allocation11 + $0x18] sm:$0xff] }
 0x170   :  { %1251 = vmatprep.subr.bf16.mxu1 %v1250_v18  ;;  %v1282_v14 = vpack.c.bf16 %v790_v12, %v789_v11  ;;  %v1286_v16 = vpack.c.bf16 %v792_v15, %v791_v13 }
 0x172   :  { %1283 = vmatprep.subr.bf16.mxu0 %v1282_v14 }
 0x224   :  { %v370_v30 = vpop.f32.mrb[0].mxu1  ;;  %v447_v31 = vpop.f32.mrb[2].mxu0 }
 0x225   :  { %v371_v32 = vadd.f32 %v370_v30, %v287_v26  ;;  %v448_v33 = vadd.f32 %v447_v31, %v295_v27  ;;  %v372_v34 = vpop.f32.mrb[1].mxu1  ;;  %v449_v35 = vpop.f32.mrb[3].mxu0  ;;  %v802_v30 = vld [vmem:[#allocation11 + $0x68] sm:$0xff] }
 0x226   :  { %v373_v38 = vadd.f32 %v372_v34, %v291_v28  ;;  %v450_v39 = vadd.f32 %v449_v35, %v299_v29  ;;  %v912_v34 = vld [vmem:[%s1708_s6] ss:$0 sm:$0xff] }
 0x227   :  { %v458_v45 = vmax.f32 %v371_v32, 0.0  ;;  %v460_v46 = vmax.f32 %v448_v33, 0.0 }
 0x228   :  { %v459_v40 = vmax.f32 %v373_v38, 0.0  ;;  %v461_v41 = vmax.f32 %v450_v39, 0.0  ;;  %v376_v42 = vpop.f32.mrb[2].mxu1  ;;  %v453_v43 = vpop.f32.mrb[4].mxu0 }
 0x229   :  { %v377_v47 = vadd.f32 %v376_v42, %v287_v26  ;;  %v454_v48 = vadd.f32 %v453_v43, %v295_v27  ;;  %v378_v49 = vpop.f32.mrb[3].mxu1  ;;  %v455_v50 = vpop.f32.mrb[5].mxu0  ;;  %v799_v26 = vld [vmem:[#allocation11 + $0x50] sm:$0xff]  ;;  %v800_v27 = vld [vmem:[#allocation11 + $0x58] sm:$0xff] }
 0x22a   :  { %v379_v51 = vadd.f32 %v378_v49, %v291_v28  ;;  %v456_v52 = vadd.f32 %v455_v50, %v299_v29  ;;  %601 = vmatprep.mubr.f32.mxu1 %v459_v40  ;;  %676 = vmatprep.mubr.f32.mxu0 %v461_v41  ;;  %v1302_v28 = vpack.c.bf16 %v800_v27, %v799_v26  ;;  %v801_v29 = vld [vmem:[#allocation11 + $0x60] sm:$0xff] }
 0x22b   :  { %602 = vmatmul.mubr.f32.vlgmr.msra.gmra.mrb[4].mxu1 %v458_v45  ;;  %677 = vmatmul.mubr.f32.vlgmr.msra.gmra.mrb[6].mxu0 %v460_v46  ;;  %v462_v57 = vmax.f32 %v377_v47, 0.0  ;;  %v464_v58 = vmax.f32 %v454_v48, 0.0  ;;  %v1306_v31 = vpack.c.bf16 %v802_v30, %v801_v29 }
 0x22c   :  { %v463_v55 = vmax.f32 %v379_v51, 0.0  ;;  %v465_v56 = vmax.f32 %v456_v52, 0.0  ;;  %1253 = vmatpush3.bf16.msra.mxu1 %v1250_v18  ;;  %v794_v18 = vld [vmem:[#allocation11 + $0x28] sm:$0xff]  ;;  %1285 = vmatpush3.bf16.msra.mxu0 %v1282_v14  ;;  %v803_v51 = vld [vmem:[#allocation11 + $0x70] sm:$0xff]  ;;  %v804_v52 = vld [vmem:[#allocation11 + $0x78] sm:$0xff] }
 0x22d   :  { %1255 = vmatprep.subr.bf16.mxu1 %v1254_v44  ;;  %1287 = vmatprep.subr.bf16.mxu0 %v1286_v16  ;;  %v1290_v19 = vpack.c.bf16 %v794_v18, %v793_v17  ;;  %v1310_v53 = vpack.c.bf16 %v804_v52, %v803_v51 }
 0x22e   :  { %606 = vmatprep.mubr.f32.mxu1 %v463_v55  ;;  %681 = vmatprep.mubr.f32.mxu0 %v465_v56 }
 0x22f   :  { %607 = vmatmul.mubr.f32.gmra.mrb[6].mxu1 %v462_v57  ;;  %682 = vmatmul.mubr.f32.gmra.mrb[8].mxu0 %v464_v58 }
 0x230   :  { %1257 = vmatpush3.bf16.msra.mxu1 %v1254_v44  ;;  %1289 = vmatpush3.bf16.msra.mxu0 %v1286_v16 }
 0x231   :  { %1259 = vmatprep.subr.bf16.mxu1 %v1258_v59  ;;  %1291 = vmatprep.subr.bf16.mxu0 %v1290_v19 }
 0x234   :  { %1261 = vmatpush3.bf16.msra.mxu1 %v1258_v59  ;;  %1293 = vmatpush3.bf16.msra.mxu0 %v1290_v19 }
 0x235   :  { %1263 = vmatprep.subr.bf16.mxu1 %v1262_v62  ;;  %1295 = vmatprep.subr.bf16.mxu0 %v1294_v22 }
 0x238   :  { %1265 = vmatpush3.bf16.msra.mxu1 %v1262_v62  ;;  %1297 = vmatpush3.bf16.msra.mxu0 %v1294_v22 }
 0x239   :  { %1267 = vmatprep.subr.bf16.mxu1 %v1266_v1  ;;  %1299 = vmatprep.subr.bf16.mxu0 %v1298_v25 }
 0x23c   :  { %1269 = vmatpush3.bf16.msra.mxu1 %v1266_v1  ;;  %1301 = vmatpush3.bf16.msra.mxu0 %v1298_v25 }
 0x23d   :  { %1271 = vmatprep.subr.bf16.mxu1 %v1270_v4  ;;  %1303 = vmatprep.subr.bf16.mxu0 %v1302_v28 }
 0x240   :  { %1273 = vmatpush3.bf16.msra.mxu1 %v1270_v4  ;;  %1305 = vmatpush3.bf16.msra.mxu0 %v1302_v28 }
 0x241   :  { %1275 = vmatprep.subr.bf16.mxu1 %v1274_v7  ;;  %1307 = vmatprep.subr.bf16.mxu0 %v1306_v31 }
 0x244   :  { %1277 = vmatpush3.bf16.msra.mxu1 %v1274_v7  ;;  %1309 = vmatpush3.bf16.msra.mxu0 %v1306_v31 }
 0x245   :  { %1279 = vmatprep.subr.bf16.mxu1 %v1278_v10  ;;  %1311 = vmatprep.subr.bf16.mxu0 %v1310_v53 }
 0x248   :  { %1281 = vmatpush3.bf16.msra.mxu1 %v1278_v10  ;;  %1313 = vmatpush3.bf16.msra.mxu0 %v1310_v53 }
 0x2fe   :  { %v953_v32 = vpop.f32.mrb[4].mxu1  ;;  %v991_v33 = vpop.f32.mrb[6].mxu0 }
 0x2ff   :  { %v954_v35 = vpop.f32.mrb[5].mxu1  ;;  %v992_v36 = vpop.f32.mrb[7].mxu0 }
 0x300   :  { %v955_v37 = vadd.f32 %v954_v35, %v953_v32  ;;  %v993_v38 = vadd.f32 %v992_v36, %v991_v33 }
 0x302   :  { %v604_v39 = vadd.f32 %v955_v37, %v912_v34  ;;  %v956_v40 = vpop.f32.mrb[6].mxu1  ;;  %v994_v41 = vpop.f32.mrb[8].mxu0 }
 0x303   :  { %v957_v42 = vpop.f32.mrb[7].mxu1  ;;  %v995_v43 = vpop.f32.mrb[9].mxu0 }
 0x304   :  { %v679_v44 = vadd.f32 %v993_v38, %v604_v39  ;;  %v958_v45 = vadd.f32 %v957_v42, %v956_v40  ;;  %v996_v46 = vadd.f32 %v995_v43, %v994_v41 }
 0x306   :  { %v687_v47 = vmax.f32 %v679_v44, 0.0  ;;  %v609_v48 = vadd.f32 %v958_v45, %v912_v34 }
 0x308   :  { %v684_v49 = vadd.f32 %v996_v46, %v609_v48  ;;  %1076 = vmatprep.mubr.f32.mxu1 %v687_v47 }
 0x30a   :  { %v688_v50 = vmax.f32 %v684_v49, 0.0 }
 0x30c   :  { %1077 = vmatmul.mubr.f32.vlgmr.msra.gmra.mrb[8].mxu1 %v688_v50 }
 0x3df   :  { %v1078_v55 = vpop.f32.mrb[8].mxu1 }
 0x3e0   :  { %v784_v56 = vadd.f32 %v1078_v55, %v913_v54  ;;  %v778_v57 = vpop.f32.mrb[9].mxu1 }
 0x3e1   :  { %v779_v58 = vadd.f32 %v913_v54, %v778_v57 }
 0x3e2   :  { %v788_v60 = vmax.f32 %v784_v56, 0.0 }
 0x3e3   :  { %v787_v59 = vmax.f32 %v779_v58, 0.0 }
 0x3e5   :  { %1111 = vmatprep.mubr.f32.mxu0 %v787_v59 }
 0x3e6   :  { %1112 = vmatmul.mubr.f32.vlgmr.msra.gmra.mrb[10].mxu0 %v788_v60 }
 0x4b9   :  { %v1113_v62 = vpop.f32.mrb[10].mxu0 }
 0x4ba   :  { %v884_v63 = vadd.f32 %v1113_v62, %v914_v61  ;;  %v878_v0 = vpop.f32.mrb[11].mxu0 }
 0x4bb   :  { %v879_v1 = vadd.f32 %v914_v61, %v878_v0 }
 0x4bc   :  { %888 = vst [vmem:[#allocation13 + $0x8] sm:$0xff] %v884_v63 }
 0x4bd   :  { %887 = vst [vmem:[#allocation13] sm:$0xff] %v879_v1 }
 0x4be   :  { %1469 = shalt.err (!%p1466_p10)
}
 0x4bf   :  { %s1470_s10 = scalar_lea.hbm %s1713_s11, 256 }
 0x4c0   :  { %p1471_p11 = scmp.ne.s32.totalorder %s1713_s11, %s1470_s10  ;;  %p1474_p12 = scmp.lt.u32.totalorder %s1470_s10, %s1713_s11 }
 0x4c2   :  { %p1476_p13 = pnand %p1474_p12, %p1471_p11 }
 0x4c4   :  { %1479 = shalt.err (!%p1476_p13)
}
 0x4c5   :  { %900 = dma.vmem_to_hbm [thread:$0]  %s895_s23, 256, %s1713_s11, [#allocation4], %s1492_s29, %s1492_s29, %s1493_s30  }
 0x4c6   :  { %1488 = dma.done.wait [#allocation4], 256  }
 0x4c7   :  { %1489 = vsyncadd [#allocation4], 4294967040 }
 0x4c8   :  { %904 = vsyncpa [#allocation3], 1 }
 0x4c9   :  { %905 = vsyncpa [#allocation6], 1 }
 0x4ca   :  { %906 = vsyncpa [#allocation9], 1 }
 0x4cb   :  { %907 = vsyncpa [#allocation12], 1 }
 0x4cc   :  { %908 = vsyncpa [#allocation4], 1 }

</bundles_post_ra>
